<compile_context>
chip_gen: v7x
topology: tpu7x:2x2x1
jax: 0.10.0
libtpu: 0.0.40
codegen_flags: <defaults>
</compile_context>

<pallas_src>
import functools
import math

import jax
import jax.numpy as jnp
from jax.experimental import pallas as pl
from jax.experimental.pallas import tpu as pltpu


def _mha_kernel(x_ref, w_in_ref, b_in_ref, w_out_ref, b_out_ref,
                out_ref, attn_ref, *, num_heads, seq_len, compute_dtype):
    """Fused multi-head self-attention for one block of batch elements.

    x_ref     : (Bb*L, E)   input rows (lane-dense 2-D slab)
    w_in_ref  : (E, 3E)     in-projection weight^T (q columns pre-scaled)
    b_in_ref  : (1, 3E)     in-projection bias (q slice pre-scaled), f32
    w_out_ref : (E, E)      out-projection weight^T
    b_out_ref : (1, E)      out-projection bias, f32
    out_ref   : (Bb*L, E)   attention value rows
    attn_ref  : (Bb*L, L)   head-averaged attention weight rows
    """
    BbL, E = x_ref.shape
    L = seq_len
    Bb = BbL // L
    H = num_heads
    D = E // H

    # ---- batch-folded QKV in-projection: one (Bb*L, E) x (E, 3E) MXU matmul.
    # Bias added in f32, then cast once; only the compute-dtype copy is live.
    qkv2d = (jnp.dot(x_ref[...], w_in_ref[...],
                     preferred_element_type=jnp.float32)
             + b_in_ref[0]).astype(compute_dtype)              # (Bb*L, 3E)
    qkv = qkv2d.reshape(Bb, L, 3 * E)                          # leading-dim split

    w_out = w_out_ref[...]                                     # (E, E)

    out_acc = jnp.zeros((Bb * L, E), jnp.float32)
    attn_acc = jnp.zeros((Bb, L, L), jnp.float32)

    # Static unroll over heads only (H is small); every matmul below is
    # batched over the whole batch block and there are no per-head stores.
    for h in range(H):
        c0 = h * D
        qh = qkv[:, :, c0:c0 + D]                              # (Bb, L, D)
        kh = qkv[:, :, E + c0:E + c0 + D]                      # (Bb, L, D)
        vh = qkv[:, :, 2 * E + c0:2 * E + c0 + D]              # (Bb, L, D)

        # scores, batched over Bb; contraction over D (no explicit transpose)
        s = jnp.einsum('bqd,bkd->bqk', qh, kh,
                       preferred_element_type=jnp.float32)     # (Bb, L, L) f32

        # softmax in f32; exact reciprocal (weights are user-visible output)
        m = jnp.max(s, axis=-1, keepdims=True)
        p = jnp.exp(s - m)
        denom = jnp.sum(p, axis=-1, keepdims=True)
        p = p * pl.reciprocal(denom, approx=False)

        attn_acc = attn_acc + p

        # per-head context, batched over Bb
        ctx = jnp.einsum('bqk,bkd->bqd', p.astype(compute_dtype), vh,
                         preferred_element_type=jnp.float32)   # (Bb, L, D)

        # fold the output projection per head: out += ctx_h @ W_out^T[hD:(h+1)D]
        out_acc = out_acc + jnp.dot(
            ctx.reshape(Bb * L, D).astype(compute_dtype),
            w_out[c0:c0 + D, :],
            preferred_element_type=jnp.float32)                # (Bb*L, E)

    # dropout rate is 0.0 in the reference module -> no-op
    # Exactly two full-tile stores per grid step.
    out_ref[...] = (out_acc + b_out_ref[0]).astype(out_ref.dtype)
    attn_ref[...] = (attn_acc * (1.0 / H)).reshape(Bb * L, L).astype(attn_ref.dtype)


def mha_forward(x, w_in, b_in, w_out, b_out, num_heads, *,
                block_b=None, use_bf16=False):
    """x: (B, L, E); w_in: (3E, E); b_in: (3E,); w_out: (E, E); b_out: (E,).

    block_b:  batch elements per grid step. Default picks the largest divisor
              of B giving >= min(B, 4) grid steps (pipelining + megacore).
    use_bf16: bf16 matmul operands with f32 accumulation (MXU-native on
              v6e/v7x); softmax and accumulation stay in f32.
    """
    B, L, E = x.shape
    assert E % num_heads == 0
    D = E // num_heads

    if block_b is None:
        block_b = 1
        for cand in range(B, 0, -1):
            if B % cand == 0 and B // cand >= min(B, 4):
                block_b = cand
                break
    assert B % block_b == 0
    n_blocks = B // block_b
    rows = block_b * L

    compute_dtype = jnp.bfloat16 if use_bf16 else jnp.float32

    # Fold the 1/sqrt(D) query scale into the in-projection weight/bias.
    scale = 1.0 / math.sqrt(D)
    col_scale = jnp.concatenate(
        [jnp.full((E,), scale, jnp.float32), jnp.ones((2 * E,), jnp.float32)])
    w_in_t = (w_in.astype(jnp.float32).T * col_scale[None, :]).astype(compute_dtype)
    b_in_s = (b_in.astype(jnp.float32) * col_scale).reshape(1, 3 * E)
    w_out_t = w_out.astype(jnp.float32).T.astype(compute_dtype)
    b_out2 = b_out.astype(jnp.float32).reshape(1, E)

    # Lane-dense 2-D slab at the boundary (no in-kernel (B, L, E) reshapes).
    x2d = x.reshape(B * L, E).astype(compute_dtype)

    kernel = functools.partial(_mha_kernel, num_heads=num_heads, seq_len=L,
                               compute_dtype=compute_dtype)

    out_shape = (
        jax.ShapeDtypeStruct((B * L, E), x.dtype),   # attention value rows
        jax.ShapeDtypeStruct((B * L, L), x.dtype),   # head-avg attention rows
    )

    # Explicit VMEM budget, re-derived from the block size and capped at
    # v7x's 64 MiB so the same tiling works across generations.
    itemsize = 2 if use_bf16 else 4
    step_bytes = rows * (3 * E * 4 + E * itemsize + 2 * E * 4 + 2 * L * 4) * 4
    weight_bytes = (3 * E * E + E * E) * itemsize + (3 * E + E) * 4
    vmem_limit = int(min(64 * 2 ** 20,
                         max(32 * 2 ** 20, 4 * (step_bytes + weight_bytes))))

    flops = (2 * B * L * E * 3 * E                 # QKV projection
             + 4 * B * num_heads * L * L * D       # QK^T and PV
             + 2 * B * L * E * E)                  # output projection
    bytes_accessed = int(
        x2d.size * x2d.dtype.itemsize
        + w_in_t.size * w_in_t.dtype.itemsize
        + w_out_t.size * w_out_t.dtype.itemsize
        + (B * L * E + B * L * L) * jnp.dtype(x.dtype).itemsize)
    cost = pl.CostEstimate(flops=flops,
                           transcendentals=B * num_heads * L * L,
                           bytes_accessed=bytes_accessed)

    out2d, attn2d = pl.pallas_call(
        kernel,
        out_shape=out_shape,
        grid_spec=pltpu.PrefetchScalarGridSpec(
            num_scalar_prefetch=0,
            grid=(n_blocks,),
            in_specs=[
                pl.BlockSpec((rows, E), lambda i: (i, 0)),      # x rows
                pl.BlockSpec((E, 3 * E), lambda i: (0, 0)),     # W_in^T (q-scaled)
                pl.BlockSpec((1, 3 * E), lambda i: (0, 0)),     # b_in (q-scaled)
                pl.BlockSpec((E, E), lambda i: (0, 0)),         # W_out^T
                pl.BlockSpec((1, E), lambda i: (0, 0)),         # b_out
            ],
            out_specs=(
                pl.BlockSpec((rows, E), lambda i: (i, 0)),
                pl.BlockSpec((rows, L), lambda i: (i, 0)),
            ),
        ),
        compiler_params=pltpu.CompilerParams(
            dimension_semantics=("parallel",),
            vmem_limit_bytes=vmem_limit),
        cost_estimate=cost,
    )(x2d, w_in_t, b_in_s, w_out_t, b_out2)

    return out2d.reshape(B, L, E), attn2d.reshape(B, L, L)


def mha_reference(x, w_in, b_in, w_out, b_out, num_heads):
    """Plain-JAX reference matching torch.nn.MultiheadAttention semantics."""
    B, L, E = x.shape
    D = E // num_heads
    qkv = jnp.einsum('ble,fe->blf', x, w_in) + b_in
    q, k, v = qkv[..., :E], qkv[..., E:2 * E], qkv[..., 2 * E:]
    q = q.reshape(B, L, num_heads, D).transpose(0, 2, 1, 3) / math.sqrt(D)
    k = k.reshape(B, L, num_heads, D).transpose(0, 2, 1, 3)
    v = v.reshape(B, L, num_heads, D).transpose(0, 2, 1, 3)
    scores = q @ k.transpose(0, 1, 3, 2)
    attn = jax.nn.softmax(scores, axis=-1)
    ctx = (attn @ v).transpose(0, 2, 1, 3).reshape(B, L, E)
    out = jnp.einsum('ble,fe->blf', ctx, w_out) + b_out
    return out, attn.mean(axis=1)


if __name__ == "__main__":
    # Small shapes consistent with the module: embed_dim=32, num_heads=4.
    B, L, E, H = 2, 8, 32, 4

    key = jax.random.PRNGKey(0)
    kx, k1, k2, k3, k4 = jax.random.split(key, 5)

    x = jax.random.normal(kx, (B, L, E), dtype=jnp.float32)

    bound = 1.0 / math.sqrt(E)
    w_in = jax.random.uniform(k1, (3 * E, E), jnp.float32, -bound, bound)
    b_in = jax.random.uniform(k2, (3 * E,), jnp.float32, -bound, bound)
    w_out = jax.random.uniform(k3, (E, E), jnp.float32, -bound, bound)
    b_out = jax.random.uniform(k4, (E,), jnp.float32, -bound, bound)

    ref_value, ref_weight = mha_reference(x, w_in, b_in, w_out, b_out, H)

    # f32 path (tight validation)
    attn_value, attn_weight = mha_forward(x, w_in, b_in, w_out, b_out, H)
    jax.block_until_ready((attn_value, attn_weight))
    assert attn_value.shape == (B, L, E)
    assert attn_weight.shape == (B, L, L)
    assert jnp.allclose(attn_value, ref_value, atol=1e-4, rtol=1e-4)
    assert jnp.allclose(attn_weight, ref_weight, atol=1e-4, rtol=1e-4)

    # bf16-operand matmul path (v6e/v7x MXU-native); softmax stays f32.
    val_bf, wgt_bf = mha_forward(x, w_in, b_in, w_out, b_out, H, use_bf16=True)
    jax.block_until_ready((val_bf, wgt_bf))
    assert jnp.allclose(val_bf, ref_value, atol=5e-2, rtol=5e-2)
    assert jnp.allclose(wgt_bf, ref_weight, atol=5e-2, rtol=5e-2)

    print("KERNEL_OK")
</pallas_src>

<mosaic_0001>
module attributes {stable_mosaic.version = 11 : i64} {
  func.func @_mha_kernel(%arg0: i32, %arg1: memref<8x32xf32, #tpu.memory_space<vmem>>, %arg2: memref<32x96xf32, #tpu.memory_space<vmem>>, %arg3: memref<1x96xf32, #tpu.memory_space<vmem>>, %arg4: memref<32x32xf32, #tpu.memory_space<vmem>>, %arg5: memref<1x32xf32, #tpu.memory_space<vmem>>, %arg6: memref<8x32xf32, #tpu.memory_space<vmem>>, %arg7: memref<8x8xf32, #tpu.memory_space<vmem>>) attributes {dimension_semantics = [#tpu.dimension_semantics<parallel>], iteration_bounds = array<i64: 2>, scalar_prefetch = 0 : i64, scratch_operands = 0 : i64, tpu.core_type = #tpu.core_type<tc>, window_params = [{transform_indices = @transform_0, window_bounds = array<i64: 8, 32>}, {pipeline_mode = #tpu.pipeline_mode<synchronous>, transform_indices = @transform_1, window_bounds = array<i64: 32, 96>}, {pipeline_mode = #tpu.pipeline_mode<synchronous>, transform_indices = @transform_2, window_bounds = array<i64: 1, 96>}, {pipeline_mode = #tpu.pipeline_mode<synchronous>, transform_indices = @transform_3, window_bounds = array<i64: 32, 32>}, {pipeline_mode = #tpu.pipeline_mode<synchronous>, transform_indices = @transform_4, window_bounds = array<i64: 1, 32>}, {transform_indices = @transform_5, window_bounds = array<i64: 8, 32>}, {transform_indices = @transform_6, window_bounds = array<i64: 8, 8>}]} {
    %c0 = arith.constant 0 : index
    %c0_0 = arith.constant 0 : index
    %0 = vector.load %arg1[%c0, %c0_0] : memref<8x32xf32, #tpu.memory_space<vmem>>, vector<8x32xf32>
    %c0_1 = arith.constant 0 : index
    %c0_2 = arith.constant 0 : index
    %1 = vector.load %arg2[%c0_1, %c0_2] : memref<32x96xf32, #tpu.memory_space<vmem>>, vector<32x96xf32>
    %cst = arith.constant dense<0.000000e+00> : vector<8x96xf32>
    %2 = tpu.matmul %0, %1, %cst {dimension_numbers = #tpu.dot_dimension_numbers<[1], [0], [0], [1], [0, 0, 1, 1], [], []>} : vector<8x32xf32>, vector<32x96xf32>, vector<8x96xf32> -> vector<8x96xf32>
    %c0_3 = arith.constant 0 : index
    %c0_4 = arith.constant 0 : index
    %3 = vector.load %arg3[%c0_3, %c0_4] : memref<1x96xf32, #tpu.memory_space<vmem>>, vector<1x96xf32>
    %4 = vector.shape_cast %3 : vector<1x96xf32> to vector<96xf32>
    %5 = vector.shape_cast %4 : vector<96xf32> to vector<1x96xf32>
    %6 = vector.broadcast %5 : vector<1x96xf32> to vector<8x96xf32>
    %7 = arith.addf %2, %6 : vector<8x96xf32>
    %8 = vector.shape_cast %7 : vector<8x96xf32> to vector<1x8x96xf32>
    %c0_5 = arith.constant 0 : index
    %c0_6 = arith.constant 0 : index
    %9 = vector.load %arg4[%c0_5, %c0_6] : memref<32x32xf32, #tpu.memory_space<vmem>>, vector<32x32xf32>
    %cst_7 = arith.constant 0.000000e+00 : f32
    %10 = vector.broadcast %cst_7 : f32 to vector<8x32xf32>
    %cst_8 = arith.constant 0.000000e+00 : f32
    %11 = vector.broadcast %cst_8 : f32 to vector<1x8x8xf32>
    %12 = vector.extract_strided_slice %8 {offsets = [0, 0, 0], sizes = [1, 8, 8], strides = [1, 1, 1]} : vector<1x8x96xf32> to vector<1x8x8xf32>
    %13 = vector.extract_strided_slice %8 {offsets = [0, 0, 32], sizes = [1, 8, 8], strides = [1, 1, 1]} : vector<1x8x96xf32> to vector<1x8x8xf32>
    %14 = vector.extract_strided_slice %8 {offsets = [0, 0, 64], sizes = [1, 8, 8], strides = [1, 1, 1]} : vector<1x8x96xf32> to vector<1x8x8xf32>
    "tpu.trace_start"() <{level = 10 : i32, message = "bqd,bkd->bqk"}> : () -> ()
    %cst_9 = arith.constant dense<0.000000e+00> : vector<1x8x8xf32>
    %15 = tpu.matmul %12, %13, %cst_9 {dimension_numbers = #tpu.dot_dimension_numbers<[2], [2], [1], [1], [0, 0, 0, 1, 1, 1], [0], [0]>} : vector<1x8x8xf32>, vector<1x8x8xf32>, vector<1x8x8xf32> -> vector<1x8x8xf32>
    "tpu.trace_stop"() : () -> ()
    %cst_10 = arith.constant dense<0xFF800000> : vector<1x8xf32>
    %16 = vector.multi_reduction <maximumf>, %15, %cst_10 [2] : vector<1x8x8xf32> to vector<1x8xf32>
    %17 = vector.shape_cast %16 : vector<1x8xf32> to vector<1x8x1xf32>
    %18 = vector.broadcast %17 : vector<1x8x1xf32> to vector<1x8x8xf32>
    %19 = arith.subf %15, %18 : vector<1x8x8xf32>
    %20 = math.exp %19 : vector<1x8x8xf32>
    %cst_11 = arith.constant dense<0.000000e+00> : vector<1x8xf32>
    %21 = vector.multi_reduction <add>, %20, %cst_11 [2] : vector<1x8x8xf32> to vector<1x8xf32>
    %22 = vector.shape_cast %21 : vector<1x8xf32> to vector<1x8x1xf32>
    %23 = tpu.reciprocal %22 : vector<1x8x1xf32> -> vector<1x8x1xf32>
    %24 = vector.broadcast %23 : vector<1x8x1xf32> to vector<1x8x8xf32>
    %25 = arith.mulf %20, %24 : vector<1x8x8xf32>
    %26 = arith.addf %11, %25 : vector<1x8x8xf32>
    "tpu.trace_start"() <{level = 10 : i32, message = "bqk,bkd->bqd"}> : () -> ()
    %cst_12 = arith.constant dense<0.000000e+00> : vector<1x8x8xf32>
    %27 = tpu.matmul %25, %14, %cst_12 {dimension_numbers = #tpu.dot_dimension_numbers<[2], [1], [1], [2], [0, 0, 0, 1, 1, 2], [0], [0]>} : vector<1x8x8xf32>, vector<1x8x8xf32>, vector<1x8x8xf32> -> vector<1x8x8xf32>
    "tpu.trace_stop"() : () -> ()
    %28 = vector.shape_cast %27 : vector<1x8x8xf32> to vector<8x8xf32>
    %29 = vector.extract_strided_slice %9 {offsets = [0, 0], sizes = [8, 32], strides = [1, 1]} : vector<32x32xf32> to vector<8x32xf32>
    %cst_13 = arith.constant dense<0.000000e+00> : vector<8x32xf32>
    %30 = tpu.matmul %28, %29, %cst_13 {dimension_numbers = #tpu.dot_dimension_numbers<[1], [0], [0], [1], [0, 0, 1, 1], [], []>} : vector<8x8xf32>, vector<8x32xf32>, vector<8x32xf32> -> vector<8x32xf32>
    %31 = arith.addf %10, %30 : vector<8x32xf32>
    %32 = vector.extract_strided_slice %8 {offsets = [0, 0, 8], sizes = [1, 8, 8], strides = [1, 1, 1]} : vector<1x8x96xf32> to vector<1x8x8xf32>
    %33 = vector.extract_strided_slice %8 {offsets = [0, 0, 40], sizes = [1, 8, 8], strides = [1, 1, 1]} : vector<1x8x96xf32> to vector<1x8x8xf32>
    %34 = vector.extract_strided_slice %8 {offsets = [0, 0, 72], sizes = [1, 8, 8], strides = [1, 1, 1]} : vector<1x8x96xf32> to vector<1x8x8xf32>
    "tpu.trace_start"() <{level = 10 : i32, message = "bqd,bkd->bqk"}> : () -> ()
    %cst_14 = arith.constant dense<0.000000e+00> : vector<1x8x8xf32>
    %35 = tpu.matmul %32, %33, %cst_14 {dimension_numbers = #tpu.dot_dimension_numbers<[2], [2], [1], [1], [0, 0, 0, 1, 1, 1], [0], [0]>} : vector<1x8x8xf32>, vector<1x8x8xf32>, vector<1x8x8xf32> -> vector<1x8x8xf32>
    "tpu.trace_stop"() : () -> ()
    %cst_15 = arith.constant dense<0xFF800000> : vector<1x8xf32>
    %36 = vector.multi_reduction <maximumf>, %35, %cst_15 [2] : vector<1x8x8xf32> to vector<1x8xf32>
    %37 = vector.shape_cast %36 : vector<1x8xf32> to vector<1x8x1xf32>
    %38 = vector.broadcast %37 : vector<1x8x1xf32> to vector<1x8x8xf32>
    %39 = arith.subf %35, %38 : vector<1x8x8xf32>
    %40 = math.exp %39 : vector<1x8x8xf32>
    %cst_16 = arith.constant dense<0.000000e+00> : vector<1x8xf32>
    %41 = vector.multi_reduction <add>, %40, %cst_16 [2] : vector<1x8x8xf32> to vector<1x8xf32>
    %42 = vector.shape_cast %41 : vector<1x8xf32> to vector<1x8x1xf32>
    %43 = tpu.reciprocal %42 : vector<1x8x1xf32> -> vector<1x8x1xf32>
    %44 = vector.broadcast %43 : vector<1x8x1xf32> to vector<1x8x8xf32>
    %45 = arith.mulf %40, %44 : vector<1x8x8xf32>
    %46 = arith.addf %26, %45 : vector<1x8x8xf32>
    "tpu.trace_start"() <{level = 10 : i32, message = "bqk,bkd->bqd"}> : () -> ()
    %cst_17 = arith.constant dense<0.000000e+00> : vector<1x8x8xf32>
    %47 = tpu.matmul %45, %34, %cst_17 {dimension_numbers = #tpu.dot_dimension_numbers<[2], [1], [1], [2], [0, 0, 0, 1, 1, 2], [0], [0]>} : vector<1x8x8xf32>, vector<1x8x8xf32>, vector<1x8x8xf32> -> vector<1x8x8xf32>
    "tpu.trace_stop"() : () -> ()
    %48 = vector.shape_cast %47 : vector<1x8x8xf32> to vector<8x8xf32>
    %49 = vector.extract_strided_slice %9 {offsets = [8, 0], sizes = [8, 32], strides = [1, 1]} : vector<32x32xf32> to vector<8x32xf32>
    %cst_18 = arith.constant dense<0.000000e+00> : vector<8x32xf32>
    %50 = tpu.matmul %48, %49, %cst_18 {dimension_numbers = #tpu.dot_dimension_numbers<[1], [0], [0], [1], [0, 0, 1, 1], [], []>} : vector<8x8xf32>, vector<8x32xf32>, vector<8x32xf32> -> vector<8x32xf32>
    %51 = arith.addf %31, %50 : vector<8x32xf32>
    %52 = vector.extract_strided_slice %8 {offsets = [0, 0, 16], sizes = [1, 8, 8], strides = [1, 1, 1]} : vector<1x8x96xf32> to vector<1x8x8xf32>
    %53 = vector.extract_strided_slice %8 {offsets = [0, 0, 48], sizes = [1, 8, 8], strides = [1, 1, 1]} : vector<1x8x96xf32> to vector<1x8x8xf32>
    %54 = vector.extract_strided_slice %8 {offsets = [0, 0, 80], sizes = [1, 8, 8], strides = [1, 1, 1]} : vector<1x8x96xf32> to vector<1x8x8xf32>
    "tpu.trace_start"() <{level = 10 : i32, message = "bqd,bkd->bqk"}> : () -> ()
    %cst_19 = arith.constant dense<0.000000e+00> : vector<1x8x8xf32>
    %55 = tpu.matmul %52, %53, %cst_19 {dimension_numbers = #tpu.dot_dimension_numbers<[2], [2], [1], [1], [0, 0, 0, 1, 1, 1], [0], [0]>} : vector<1x8x8xf32>, vector<1x8x8xf32>, vector<1x8x8xf32> -> vector<1x8x8xf32>
    "tpu.trace_stop"() : () -> ()
    %cst_20 = arith.constant dense<0xFF800000> : vector<1x8xf32>
    %56 = vector.multi_reduction <maximumf>, %55, %cst_20 [2] : vector<1x8x8xf32> to vector<1x8xf32>
    %57 = vector.shape_cast %56 : vector<1x8xf32> to vector<1x8x1xf32>
    %58 = vector.broadcast %57 : vector<1x8x1xf32> to vector<1x8x8xf32>
    %59 = arith.subf %55, %58 : vector<1x8x8xf32>
    %60 = math.exp %59 : vector<1x8x8xf32>
    %cst_21 = arith.constant dense<0.000000e+00> : vector<1x8xf32>
    %61 = vector.multi_reduction <add>, %60, %cst_21 [2] : vector<1x8x8xf32> to vector<1x8xf32>
    %62 = vector.shape_cast %61 : vector<1x8xf32> to vector<1x8x1xf32>
    %63 = tpu.reciprocal %62 : vector<1x8x1xf32> -> vector<1x8x1xf32>
    %64 = vector.broadcast %63 : vector<1x8x1xf32> to vector<1x8x8xf32>
    %65 = arith.mulf %60, %64 : vector<1x8x8xf32>
    %66 = arith.addf %46, %65 : vector<1x8x8xf32>
    "tpu.trace_start"() <{level = 10 : i32, message = "bqk,bkd->bqd"}> : () -> ()
    %cst_22 = arith.constant dense<0.000000e+00> : vector<1x8x8xf32>
    %67 = tpu.matmul %65, %54, %cst_22 {dimension_numbers = #tpu.dot_dimension_numbers<[2], [1], [1], [2], [0, 0, 0, 1, 1, 2], [0], [0]>} : vector<1x8x8xf32>, vector<1x8x8xf32>, vector<1x8x8xf32> -> vector<1x8x8xf32>
    "tpu.trace_stop"() : () -> ()
    %68 = vector.shape_cast %67 : vector<1x8x8xf32> to vector<8x8xf32>
    %69 = vector.extract_strided_slice %9 {offsets = [16, 0], sizes = [8, 32], strides = [1, 1]} : vector<32x32xf32> to vector<8x32xf32>
    %cst_23 = arith.constant dense<0.000000e+00> : vector<8x32xf32>
    %70 = tpu.matmul %68, %69, %cst_23 {dimension_numbers = #tpu.dot_dimension_numbers<[1], [0], [0], [1], [0, 0, 1, 1], [], []>} : vector<8x8xf32>, vector<8x32xf32>, vector<8x32xf32> -> vector<8x32xf32>
    %71 = arith.addf %51, %70 : vector<8x32xf32>
    %72 = vector.extract_strided_slice %8 {offsets = [0, 0, 24], sizes = [1, 8, 8], strides = [1, 1, 1]} : vector<1x8x96xf32> to vector<1x8x8xf32>
    %73 = vector.extract_strided_slice %8 {offsets = [0, 0, 56], sizes = [1, 8, 8], strides = [1, 1, 1]} : vector<1x8x96xf32> to vector<1x8x8xf32>
    %74 = vector.extract_strided_slice %8 {offsets = [0, 0, 88], sizes = [1, 8, 8], strides = [1, 1, 1]} : vector<1x8x96xf32> to vector<1x8x8xf32>
    "tpu.trace_start"() <{level = 10 : i32, message = "bqd,bkd->bqk"}> : () -> ()
    %cst_24 = arith.constant dense<0.000000e+00> : vector<1x8x8xf32>
    %75 = tpu.matmul %72, %73, %cst_24 {dimension_numbers = #tpu.dot_dimension_numbers<[2], [2], [1], [1], [0, 0, 0, 1, 1, 1], [0], [0]>} : vector<1x8x8xf32>, vector<1x8x8xf32>, vector<1x8x8xf32> -> vector<1x8x8xf32>
    "tpu.trace_stop"() : () -> ()
    %cst_25 = arith.constant dense<0xFF800000> : vector<1x8xf32>
    %76 = vector.multi_reduction <maximumf>, %75, %cst_25 [2] : vector<1x8x8xf32> to vector<1x8xf32>
    %77 = vector.shape_cast %76 : vector<1x8xf32> to vector<1x8x1xf32>
    %78 = vector.broadcast %77 : vector<1x8x1xf32> to vector<1x8x8xf32>
    %79 = arith.subf %75, %78 : vector<1x8x8xf32>
    %80 = math.exp %79 : vector<1x8x8xf32>
    %cst_26 = arith.constant dense<0.000000e+00> : vector<1x8xf32>
    %81 = vector.multi_reduction <add>, %80, %cst_26 [2] : vector<1x8x8xf32> to vector<1x8xf32>
    %82 = vector.shape_cast %81 : vector<1x8xf32> to vector<1x8x1xf32>
    %83 = tpu.reciprocal %82 : vector<1x8x1xf32> -> vector<1x8x1xf32>
    %84 = vector.broadcast %83 : vector<1x8x1xf32> to vector<1x8x8xf32>
    %85 = arith.mulf %80, %84 : vector<1x8x8xf32>
    %86 = arith.addf %66, %85 : vector<1x8x8xf32>
    "tpu.trace_start"() <{level = 10 : i32, message = "bqk,bkd->bqd"}> : () -> ()
    %cst_27 = arith.constant dense<0.000000e+00> : vector<1x8x8xf32>
    %87 = tpu.matmul %85, %74, %cst_27 {dimension_numbers = #tpu.dot_dimension_numbers<[2], [1], [1], [2], [0, 0, 0, 1, 1, 2], [0], [0]>} : vector<1x8x8xf32>, vector<1x8x8xf32>, vector<1x8x8xf32> -> vector<1x8x8xf32>
    "tpu.trace_stop"() : () -> ()
    %88 = vector.shape_cast %87 : vector<1x8x8xf32> to vector<8x8xf32>
    %89 = vector.extract_strided_slice %9 {offsets = [24, 0], sizes = [8, 32], strides = [1, 1]} : vector<32x32xf32> to vector<8x32xf32>
    %cst_28 = arith.constant dense<0.000000e+00> : vector<8x32xf32>
    %90 = tpu.matmul %88, %89, %cst_28 {dimension_numbers = #tpu.dot_dimension_numbers<[1], [0], [0], [1], [0, 0, 1, 1], [], []>} : vector<8x8xf32>, vector<8x32xf32>, vector<8x32xf32> -> vector<8x32xf32>
    %91 = arith.addf %71, %90 : vector<8x32xf32>
    %c0_29 = arith.constant 0 : index
    %c0_30 = arith.constant 0 : index
    %92 = vector.load %arg5[%c0_29, %c0_30] : memref<1x32xf32, #tpu.memory_space<vmem>>, vector<1x32xf32>
    %93 = vector.shape_cast %92 : vector<1x32xf32> to vector<32xf32>
    %94 = vector.shape_cast %93 : vector<32xf32> to vector<1x32xf32>
    %95 = vector.broadcast %94 : vector<1x32xf32> to vector<8x32xf32>
    %96 = arith.addf %91, %95 : vector<8x32xf32>
    %c0_31 = arith.constant 0 : index
    %c0_32 = arith.constant 0 : index
    %97 = vector.load %arg6[%c0_31, %c0_32] : memref<8x32xf32, #tpu.memory_space<vmem>>, vector<8x32xf32>
    tpu.vector_store %arg6[%c0_31, %c0_32], %96 {strides = array<i32>} : memref<8x32xf32, #tpu.memory_space<vmem>>, vector<8x32xf32>,
    %cst_33 = arith.constant 2.500000e-01 : f32
    %98 = vector.broadcast %cst_33 : f32 to vector<1x8x8xf32>
    %99 = arith.mulf %86, %98 : vector<1x8x8xf32>
    %100 = vector.shape_cast %99 : vector<1x8x8xf32> to vector<8x8xf32>
    %c0_34 = arith.constant 0 : index
    %c0_35 = arith.constant 0 : index
    %101 = vector.load %arg7[%c0_34, %c0_35] : memref<8x8xf32, #tpu.memory_space<vmem>>, vector<8x8xf32>
    tpu.vector_store %arg7[%c0_34, %c0_35], %100 {strides = array<i32>} : memref<8x8xf32, #tpu.memory_space<vmem>>, vector<8x8xf32>,
    return
  }
  func.func @transform_0(%arg0: i32) -> (i32, i32) {
    %c0_i32 = arith.constant 0 : i32
    %c0_i32_0 = arith.constant 0 : i32
    return %arg0, %c0_i32 : i32, i32
  }
  func.func @transform_1(%arg0: i32) -> (i32, i32) {
    %c0_i32 = arith.constant 0 : i32
    %c0_i32_0 = arith.constant 0 : i32
    %c0_i32_1 = arith.constant 0 : i32
    return %c0_i32, %c0_i32_0 : i32, i32
  }
  func.func @transform_2(%arg0: i32) -> (i32, i32) {
    %c0_i32 = arith.constant 0 : i32
    %c0_i32_0 = arith.constant 0 : i32
    %c0_i32_1 = arith.constant 0 : i32
    return %c0_i32, %c0_i32_0 : i32, i32
  }
  func.func @transform_3(%arg0: i32) -> (i32, i32) {
    %c0_i32 = arith.constant 0 : i32
    %c0_i32_0 = arith.constant 0 : i32
    %c0_i32_1 = arith.constant 0 : i32
    return %c0_i32, %c0_i32_0 : i32, i32
  }
  func.func @transform_4(%arg0: i32) -> (i32, i32) {
    %c0_i32 = arith.constant 0 : i32
    %c0_i32_0 = arith.constant 0 : i32
    %c0_i32_1 = arith.constant 0 : i32
    return %c0_i32, %c0_i32_0 : i32, i32
  }
  func.func @transform_5(%arg0: i32) -> (i32, i32) {
    %c0_i32 = arith.constant 0 : i32
    %c0_i32_0 = arith.constant 0 : i32
    return %arg0, %c0_i32 : i32, i32
  }
  func.func @transform_6(%arg0: i32) -> (i32, i32) {
    %c0_i32 = arith.constant 0 : i32
    %c0_i32_0 = arith.constant 0 : i32
    return %arg0, %c0_i32 : i32, i32
  }
}

</mosaic_0001>

<bundles_post_ra>
// kernel: tpu_custom_call.1
= control target key start
LH: loop header
LB: loop body
LE: loop exit
PB: predicated region body
PF: predicated region fallthrough
CT: control target
= control target key end

     0   :  { %12 = vsyncpa [#allocation3], 0  ;;  %s2277_s0 = inlined_call_operand.hbm [shape: f32[16,32], index: 0, kind: input, shape index: {}]   ;;  %s2278_s1 = inlined_call_operand.hbm [shape: f32[32,96], index: 1, kind: input, shape index: {}]   ;;  %s2279_s2 = inlined_call_operand.vmem [shape: f32[1,96], index: 2, kind: input, shape index: {}]   ;;  %s2280_s3 = inlined_call_operand.hbm [shape: f32[32,32], index: 3, kind: input, shape index: {}]   ;;  %s2281_s4 = inlined_call_operand.vmem [shape: f32[1,32], index: 4, kind: input, shape index: {}]   ;;  %s2282_s5 = inlined_call_operand.hbm [shape: f32[16,32], index: 5, kind: output, shape index: {0}]   ;;  %s2283_s6 = inlined_call_operand.vmem [shape: f32[16,8], index: 6, kind: output, shape index: {1}]  }
   0x1   :  { %14 = vsyncpa [#allocation3 + $0x1], 0 }
   0x2   :  { %15 = vsyncpa [#allocation6], 0 }
   0x3   :  { %16 = vsyncpa [#allocation4], 0 }
   0x4   :  { %18 = vsyncpa [#allocation4 + $0x1], 0  ;;  %s1954_s21 = smov 0   ;;  %s1956_s22 = smov 0  }
   0x5   :  { %s1958_s23 = smov 0   ;;  %s1960_s24 = smov 0  }
   0x6 LB: > { %s1975_s25 = sadd.s32 4294967295, %s1897_s24   ;;  %s1500_s26 = sadd.s32 4294967294, %s1897_s24   ;;  %s1897_s24 = sphi %s1960_s24, %s2303_s24   ;;  %s1893_s23 = sphi %s1958_s23, %s2302_s23   ;;  %s1889_s22 = sphi %s1956_s22, %s2301_s22   ;;  %s1885_s21 = sphi %s1954_s21, %s2300_s21  }
   0x7   : > { %p44_p0 = scmp.ne.s32.totalorder %s1889_s22, %s1885_s21  ;;  %p2284_p1 = scmp.eq.s32.totalorder %s1975_s25, 0 }
   0x8   : > { %p158_p3 = scmp.eq.s32.totalorder %s1500_s26, 1  ;;  %p1501_p5 = scmp.ge.s32.totalorder %s1897_s24, 1 }
   0x9   : > { %p1984_p4 = por %p2284_p1, %p44_p0  ;;  %p191_p7 = scmp.lt.s32.totalorder %s1897_s24, 3 }
   0xa   : > { %p1989_p6 = por %p158_p3, %p44_p0  ;;  %s1899_s30 = smov [#allocation5]  }
   0xb   : > { %s2287_s27 = scalar_select %p1984_p4, 1, 0 }
   0xc   : > { %s2288_s28 = scalar_select %p1989_p6, 1, 0 }
   0xd   : > { %p1994_p8 = pnand %p1501_p5, %p191_p7  ;;  %s203_s7 = sshll.u32 %s1899_s30, 4  ;;  %s1998_s7 = int_to_ptr.vmem [resolvable:$true] %s203_s7 }
   0xe   : > { %s1900_s9 = smov [#allocation7]   ;;  %s1741_s13 = scalar_lea.hbm %s2278_s1, 512 }
   0xf   : > { %p1654_p9 = pneg %p1994_p8  ;;  %s219_s10 = sshll.u32 %s1900_s9, 4  ;;  %s2009_s10 = int_to_ptr.vmem [resolvable:$true] %s219_s10 }
  0x10   : > { %p1742_p12 = scmp.ne.s32.totalorder %s2278_s1, %s1741_s13  ;;  %p1748_p5 = scmp.lt.u32.totalorder %s1741_s13, %s2278_s1 }
  0x11   : > { %p2005_p11 = pnand %p1654_p9, %p2284_p1 }
  0x13   : > { %p1743_p13 = pneg %p2005_p11 }
  0x15   : > { %p1744_p0 = pnand %p1743_p13, %p1742_p12 }
  0x17   : > { %p1745_p3 = pneg %p1744_p0 }
  0x19   : > { %p1750_p7 = pnand %p1748_p5, %p1745_p3 }
  0x1b   : > { %1753 = shalt.err (!%p1750_p7)
}
  0x1c   : > { %s1754_s18 = scalar_lea.vmem %s1998_s7, 512  ;;  %p1762_p2 = scmp.lt.s32.totalorder %s1998_s7, %s1998_s7 }
  0x1d   : > { %p1755_p9 = scmp.ne.s32.totalorder %s1998_s7, %s1754_s18  ;;  %p1763_p12 = scmp.lt.s32.totalorder %s1754_s18, %s1754_s18 }
  0x1f   : > { %p1757_p10 = pnand %p1755_p9, %p1743_p13  ;;  %p1764_p0 = por %p1763_p12, %p1762_p2 }
  0x21   : > { %p1758_p1 = pneg %p1757_p10 }
  0x23   : > { %p1765_p6 = pnand %p1764_p0, %p1758_p1 }
  0x25   : > { %1768 = shalt.err (!%p1765_p6)
}
  0x26   : > { %s1901_s19 = smov 128   ;;  %s1902_s20 = smov 8  }
  0x27   : > { %1657 = dma.hbm_to_vmem [thread:$0]  (!%p2005_p11), %s2278_s1, 512, %s1998_s7, [#allocation6], %s1901_s19, %s1901_s19, %s1902_s20  }
  0x28   : > { %s1769_s12 = scalar_lea.hbm %s2280_s3, 512 }
  0x29   : > { %p1770_p2 = scmp.ne.s32.totalorder %s2280_s3, %s1769_s12  ;;  %p1776_p10 = scmp.lt.u32.totalorder %s1769_s12, %s2280_s3 }
  0x2b   : > { %p1772_p1 = pnand %p1770_p2, %p1743_p13 }
  0x2d   : > { %p1773_p6 = pneg %p1772_p1 }
  0x2f   : > { %p1778_p3 = pnand %p1776_p10, %p1773_p6 }
  0x31   : > { %1781 = shalt.err (!%p1778_p3)
}
  0x32   : > { %s1782_s7 = scalar_lea.vmem %s2009_s10, 512  ;;  %p1790_p12 = scmp.lt.s32.totalorder %s2009_s10, %s2009_s10 }
  0x33   : > { %p1783_p5 = scmp.ne.s32.totalorder %s2009_s10, %s1782_s7  ;;  %p1791_p0 = scmp.lt.s32.totalorder %s1782_s7, %s1782_s7 }
  0x35   : > { %p1785_p7 = pnand %p1783_p5, %p1743_p13  ;;  %p1792_p2 = por %p1791_p0, %p1790_p12 }
  0x37   : > { %p1786_p9 = pneg %p1785_p7 }
  0x39   : > { %p1793_p1 = pnand %p1792_p2, %p1786_p9 }
  0x3b   : > { %1796 = shalt.err (!%p1793_p1)
}
  0x3c   : > { %1660 = dma.hbm_to_vmem [thread:$0]  (!%p2005_p11), %s2280_s3, 512, %s2009_s10, [#allocation6], %s1901_s19, %s1901_s19, %s1902_s20  }
  0x3d   : > { %s2064_s26 = sadd.s32 1, %s1897_s24   ;;  %s31_s8 = sadd.s32 1, %s1893_s23 }
  0x3e   : > { %s28_s30 = ssub.s32 %s1897_s24, %s2064_s26  ;;  %p38_p13 = scmp.ne.s32.totalorder %s1893_s23, %s1889_s22 }
  0x3f   : > { %p29_p6 = scmp.eq.s32.totalorder %s28_s30, 0  ;;  %p39_p10 = scmp.eq.s32.totalorder %s1897_s24, 0 }
  0x40   : > { %p2291_p3 = scmp.eq.s32.totalorder %s1975_s25, 1  ;;  %p1671_p7 = scmp.lt.s32.totalorder %s1897_s24, 2 }
  0x41   : > { %s2080_s11 = scalar_select %p29_p6, %s1893_s23, %s31_s8  }
  0x42   : > { %p2074_p5 = por %p2291_p3, %p38_p13  ;;  %p40_p9 = por %p39_p10, %p38_p13 }
  0x43   : > { %s236_s12 = sand.u32 1, %s1893_s23   ;;  %s1506_s10 = sshll.u32 %s1897_s24, 7 }
  0x44   : > { %s2292_s9 = scalar_select %p2074_p5, 1, 0 }
  0x45   : > { %s1505_s13 = sshll.u32 %s236_s12, 3  ;;  %s2087_s14 = scalar_lea.hbm %s2277_s0, %s1506_s10 }
  0x46   : > { %s240_s15 = scalar_lea.vmem [#allocation2], %s1505_s13  ;;  %p2091_p11 = pnand %p1671_p7, %p40_p9 }
  0x47   : > { %s247_s16 = sshll.u32 %s240_s15, 4  ;;  %s237_s17 = scalar_lea.sflag [#allocation3], %s236_s12  ;;  %s2089_s16 = int_to_ptr.vmem [resolvable:$true] %s247_s16 }
  0x48   : > { %s1797_s18 = scalar_lea.hbm %s2087_s14, 128  ;;  %p1799_p0 = pneg %p2091_p11 }
  0x49   : > { %p1798_p12 = scmp.ne.s32.totalorder %s2087_s14, %s1797_s18  ;;  %s1802_s13 = scalar_lea.hbm %s2277_s0, 256 }
  0x4a   : > { %p1803_p13 = scmp.lt.u32.totalorder %s2087_s14, %s2277_s0  ;;  %p1804_p6 = scmp.lt.u32.totalorder %s1802_s13, %s1797_s18 }
  0x4b   : > { %p1800_p2 = pnand %p1799_p0, %p1798_p12  ;;  %p1806_p3 = scmp.lt.u32.totalorder %s1797_s18, %s2087_s14 }
  0x4c   : > { %p1805_p10 = por %p1804_p6, %p1803_p13 }
  0x4d   : > { %p1801_p1 = pneg %p1800_p2 }
  0x4e   : > { %p1807_p7 = por %p1806_p3, %p1805_p10 }
  0x50   : > { %p1808_p9 = pnand %p1807_p7, %p1801_p1 }
  0x52   : > { %1811 = shalt.err (!%p1808_p9)
}
  0x53   : > { %s1812_s12 = scalar_lea.vmem %s2089_s16, 128  ;;  %s1903_s20 = smov [#allocation2]  }
  0x54   : > { %p1813_p12 = scmp.ne.s32.totalorder %s2089_s16, %s1812_s12  ;;  %s1817_s15 = sshll.u32 %s1903_s20, 4  ;;  %s1818_s15 = int_to_ptr.vmem [resolvable:$false] %s1817_s15 }
  0x55   : > { %s1819_s8 = scalar_lea.vmem %s1818_s15, 256  ;;  %p1820_p4 = scmp.lt.s32.totalorder %s2089_s16, %s1818_s15 }
  0x56   : > { %p1815_p2 = pnand %p1813_p12, %p1799_p0  ;;  %p1821_p13 = scmp.lt.s32.totalorder %s1819_s8, %s1812_s12 }
  0x58   : > { %p1816_p5 = pneg %p1815_p2  ;;  %p1822_p6 = por %p1821_p13, %p1820_p4 }
  0x5a   : > { %p1823_p10 = pnand %p1822_p6, %p1816_p5 }
  0x5c   : > { %1826 = shalt.err (!%p1823_p10)
}
  0x5d   : > { %1664 = dma.hbm_to_vmem [thread:$0]  (!%p2091_p11), %s2087_s14, 128, %s2089_s16, %s237_s17  }
  0x5e   : > { %256 = sbr.rel (%p1994_p8) target bundleno = 2691 (0xa83), region = 40  ;;  %s2123_s18 = sand.u32 (!%p1994_p8), 1, %s1889_s22  }
  0x5f   : > { %s1508_s30 = sshll.u32 (!%p1994_p8), %s2123_s18, 3  ;;  %s259_s13 = scalar_lea.sflag (!%p1994_p8), [#allocation3], %s2123_s18 }
  0x60   : > { %s262_s10 = scalar_lea.vmem (!%p1994_p8), [#allocation2], %s1508_s30  ;;  %p2294_p4 = scmp.ne.s32.totalorder (!%p1994_p8), %s2287_s27, 0 }
  0x65   : > { %1872 = dma.done.wait (%p2294_p4), %s259_s13, 128  }
  0x66   : > { %1874 = vsyncadd (%p2294_p4), %s259_s13, 4294967168  ;;  %p2295_p5 = scmp.eq.s32.totalorder %s1975_s25, 0 }
  0x68   : > { %1876 = dma.done.wait (%p2295_p5), [#allocation6], 1024   ;;  %p2296_p8 = pmov %p2295_p5 }
  0x69   : > { %v1904_v0 = vmov 0.0|0.0   ;;  %vm1905_vm0 = vmmov 0   ;;  %v1906_v1 = vmov 0.0   ;;  %v308_v2 = vld [vmem:[#allocation5] sm:$0xff]  ;;  %v309_v3 = vld [vmem:[#allocation5 + $0x8] sm:$0xff]  ;;  %v310_v4 = vld [vmem:[#allocation5 + $0x10] sm:$0xff] }
  0x6a   : > { %1878 = vsyncadd (%p2296_p8), [#allocation6], 4294966272  ;;  %1636 = vmatprep.subr.bf16.mxu0 %v1904_v0  ;;  %1573 = vmatprep.mubr.msk.f32.mxu0 %vm1905_vm0, %v1906_v1  ;;  %v1637_v5 = vpack.c.bf16 %v309_v3, %v308_v2  ;;  %v311_v6 = vld [vmem:[#allocation5 + $0x18] sm:$0xff]  ;;  %vm319_vm1 = vcmask 261120   ;;  %v1513_v9 = vld [vmem:[%s2279_s2] ss:$0 sm:$0xff] }
  0x6b   : > { %1576 = vmatprep.subr.mxu1 %v1906_v1  ;;  %1578 = vmatprep.mubr.msk.f32.mxu1 %vm1905_vm0, %v1906_v1  ;;  %v1640_v7 = vpack.c.bf16 %v311_v6, %v310_v4  ;;  %v307_v8 = vld [vmem:[%s262_s10] sm:$0xff]  ;;  %s1907_s14 = smov 120   ;;  %s1908_s16 = smov 96   ;;  %vm400_vm2 = vcmask 64512   ;;  %v394_v32 = vld [vmem:[#allocation7 + $0x8] sm:$0xff]  ;;  %v393_v42 = vld [vmem:[#allocation7] sm:$0xff] }
  0x6c   : > { %1638 = vmatpush3.bf16.msra.mxu0 %v1637_v5  ;;  %s1909_s7 = smov 88   ;;  %s1910_s17 = smov 56   ;;  %v395_v6 = vld [vmem:[#allocation7 + $0x10] sm:$0xff] }
  0x6d   : > { %1639 = vmatprep.subr.bf16.mxu0 %v1904_v0  ;;  %s1911_s19 = smov 64   ;;  %s1912_s12 = smov 80  }
  0x6e   : > { %s1913_s20 = smov 112   ;;  %s1914_s15 = smov 72  }
  0x6f   : > { %s1915_s8 = smov 104   ;;  %s1916_s13 = smov 48  }
  0x70   : > { %1641 = vmatpush3.bf16.msra.mxu0 %v1640_v7  ;;  %s1917_s10 = smov 40   ;;  %p303_p11 = scmp.lt.s32.totalorder %s1975_s25, 1 }
  0x71   : > { %1586 = vmatprep.subr.mxu0 %v1906_v1  ;;  %p2297_p1 = scmp.ne.s32.totalorder %s2292_s9, 0 }
  0x72   : > { %s304_s27 = scalar_select %p303_p11, %s1975_s25, 1 }
  0x73   : > { %1574 = vmatmul.mubr.msk.f32.vlgmr.msra.gmra.mrb[0].mxu0 %vm319_vm1, %v307_v8 }
  0x74   : > { %1588 = vmatprep.mubr.msk.f32.mxu0 %vm1905_vm0, %v1906_v1  ;;  %s1512_s29 = sshll.u32 %s304_s27, 3  ;;  %s1367_s27 = scalar_lea.sflag [#allocation4], %s2123_s18 }
 0x146   : > { %v389_v10 = vpop.f32.mrb[0].mxu0 }
 0x147   : > { %v2149_v11 = vadd.f32 %v1513_v9, %v389_v10  ;;  %v1575_v12 = vpop.f32.mrb[1].mxu0 }
 0x149   : > { %563 = vrot.lane.b32.xlu1 %v2149_v11, %s1907_s14  ;;  %398 = vrot.lane.b32.xlu0 %v2149_v11, %s1908_s16 }
 0x14d   : > { %565 = vrot.lane.b32.xlu0 %v2149_v11, %s1909_s7  ;;  %s306_s7 = scalar_lea.vmem %s2283_s6, %s1512_s29 }
 0x1bb   : > { %v399_v13 = vpop.permute.xlu0 %398  ;;  %v564_v15 = vpop.permute.xlu1 %563 }
 0x1bc   : > { %1577 = vmatpush3.xpose.msk.msra.mxu1 %vm400_vm2, %v399_v13 }
 0x1bd   : > { %1581 = vmatprep.subr.mxu1 %v1906_v1 }
 0x1bf   : > { %1579 = vmatmul.mubr.msk.f32.vlgmr.msra.gmra.mrb[0].mxu1 %vm400_vm2, %v2149_v11  ;;  %v566_v14 = vpop.permute.xlu0 %565 }
 0x1c0   : > { %1587 = vmatpush3.xpose.msk.msra.mxu0 %vm400_vm2, %v566_v14  ;;  %1583 = vmatprep.mubr.msk.f32.mxu1 %vm1905_vm0, %v1906_v1 }
 0x1c1   : > { %1596 = vmatprep.subr.mxu0 %v1906_v1 }
 0x1c3   : > { %1589 = vmatmul.mubr.msk.f32.vlgmr.msra.gmra.mrb[2].mxu0 %vm400_vm2, %v564_v15 }
 0x1c4   : > { %1598 = vmatprep.mubr.msk.f32.mxu0 %vm1905_vm0, %v1906_v1  ;;  %1597 = vmatpush3.msra.mxu0 %v394_v32 }
 0x1c5   : > { %1606 = vmatprep.subr.mxu0 %v1906_v1 }
 0x292   : > { %v471_v16 = vpop.f32.mrb[0].mxu1 }
 0x293   : > { %v1580_v17 = vpop.f32.mrb[1].mxu1  ;;  %v475_v18 = vsel %vm400_vm2, %v471_v16, -inf }
 0x294   : > { %476 = vmax.xlane.f32.xlu1 %v475_v18 }
 0x296   : > { %v637_v19 = vpop.f32.mrb[2].mxu0 }
 0x297   : > { %v1590_v20 = vpop.f32.mrb[3].mxu0  ;;  %v641_v21 = vsel %vm400_vm2, %v637_v19, -inf }
 0x298   : > { %642 = vmax.xlane.f32.xlu0 %v641_v21 }
 0x321   : > { %v477_v22 = vpop.xlane.xlu1 %476 }
 0x322   : > { %v478_v23 = vsub.f32 %v471_v16, %v477_v22 }
 0x324   : > { %v479_v24 = vmul.f32 1.442695, %v478_v23 }
 0x325   : > { %v643_v25 = vpop.xlane.xlu0 %642 }
 0x326   : > { %1725 = vpow2.f32 %v479_v24  ;;  %v644_v26 = vsub.f32 %v637_v19, %v643_v25 }
 0x328   : > { %v645_v27 = vmul.f32 1.442695, %v644_v26 }
 0x32a   : > { %1727 = vpow2.f32 %v645_v27 }
 0x330   : > { %v1726_v28 = vpop.eup %1725 }
 0x331   : > { %v481_v29 = vsel %vm400_vm2, %v1726_v28, 0.0 }
 0x332   : > { %482 = vadd.xlane.f32.xlu0 %v481_v29  ;;  %v1531_v29 = vld [vmem:[%s2281_s4] ss:$0 sm:$0xff] }
 0x334   : > { %v1728_v30 = vpop.eup %1727 }
 0x335   : > { %v647_v31 = vsel %vm400_vm2, %v1728_v30, 0.0 }
 0x336   : > { %648 = vadd.xlane.f32.xlu1 %v647_v31 }
 0x347   : > { %653 = vrot.lane.b32.xlu1 %v2149_v11, %s1910_s17 }
 0x348   : > { %487 = vrot.lane.b32.xlu0 %v2149_v11, %s1911_s19 }
 0x34b   : > { %877 = vrot.lane.b32.xlu1 %v2149_v11, %s1912_s12  ;;  %s1533_s12 = sshll.u32 %s1975_s25, 7 }
 0x34c   : > { %875 = vrot.lane.b32.xlu0 %v2149_v11, %s1913_s20  ;;  %s296_s20 = scalar_lea.vmem [#allocation8], %s1508_s30  ;;  %s1918_s30 = smov [#allocation8]  }
 0x34d   : > { %s1831_s29 = sshll.u32 %s1918_s30, 4  ;;  %s1832_s29 = int_to_ptr.vmem [resolvable:$false] %s1831_s29 }
 0x34e   : > { %s1833_s14 = scalar_lea.vmem %s1832_s29, 256 }
 0x3bf   : > { %v483_v33 = vpop.xlane.xlu0 %482 }
 0x3c0   : > { %1729 = vrcp.f32 %v483_v33 }
 0x3c3   : > { %v649_v34 = vpop.xlane.xlu1 %648  ;;  %v488_v35 = vpop.permute.xlu0 %487 }
 0x3c4   : > { %1731 = vrcp.f32 %v649_v34  ;;  %1582 = vmatpush3.msra.mxu1 %v488_v35 }
 0x3c5   : > { %1591 = vmatprep.subr.mxu1 %v1906_v1 }
 0x3c7   : > { %v654_v38 = vpop.permute.xlu1 %653  ;;  %v876_v48 = vpop.permute.xlu0 %875 }
 0x3ca   : > { %v1730_v36 = vpop.eup %1729 }
 0x3cb   : > { %v485_v37 = vmul.f32 %v1730_v36, %v1726_v28  ;;  %v878_v46 = vpop.permute.xlu1 %877 }
 0x3cd   : > { %1584 = vmatmul.mubr.msk.f32.vlgmr.msra.gmra.mrb[2].mxu1 %vm400_vm2, %v485_v37 }
 0x3ce   : > { %v1732_v39 = vpop.eup %1731  ;;  %1592 = vmatpush3.msra.mxu1 %v654_v38  ;;  %1593 = vmatprep.mubr.msk.f32.mxu1 %vm1905_vm0, %v1906_v1 }
 0x3cf   : > { %v651_v40 = vmul.f32 %v1732_v39, %v1728_v30  ;;  %1601 = vmatprep.subr.mxu1 %v1906_v1 }
 0x3d1   : > { %v652_v41 = vadd.f32 %v651_v40, %v485_v37  ;;  %1594 = vmatmul.mubr.msk.f32.vlgmr.msra.gmra.mrb[4].mxu1 %vm400_vm2, %v651_v40 }
 0x3d2   : > { %1603 = vmatprep.mubr.msk.f32.mxu1 %vm1905_vm0, %v1906_v1  ;;  %1602 = vmatpush3.msra.mxu1 %v393_v42 }
 0x3d3   : > { %1611 = vmatprep.subr.mxu1 %v1906_v1 }
 0x4a0   : > { %v559_v43 = vpop.f32.mrb[2].mxu1 }
 0x4a1   : > { %v1585_v44 = vpop.f32.mrb[3].mxu1  ;;  %1604 = vmatmul.mubr.msk.f32.vlgmr.msra.gmra.mrb[6].mxu1 %vm400_vm2, %v559_v43 }
 0x4a2   : > { %1613 = vmatprep.mubr.msk.f32.mxu1 %vm1905_vm0, %v1906_v1 }
 0x4a4   : > { %v725_v45 = vpop.f32.mrb[4].mxu1 }
 0x4a5   : > { %v1595_v47 = vpop.f32.mrb[5].mxu1  ;;  %1599 = vmatmul.mubr.msk.f32.vlgmr.msra.gmra.mrb[4].mxu0 %vm400_vm2, %v725_v45 }
 0x4a6   : > { %1607 = vmatpush3.xpose.msk.msra.mxu0 %vm400_vm2, %v878_v46  ;;  %1608 = vmatprep.mubr.msk.f32.mxu0 %vm1905_vm0, %v1906_v1 }
 0x4a7   : > { %1616 = vmatprep.subr.mxu0 %v1906_v1 }
 0x4a9   : > { %1609 = vmatmul.mubr.msk.f32.vlgmr.msra.gmra.mrb[6].mxu0 %vm400_vm2, %v876_v48 }
 0x4aa   : > { %1618 = vmatprep.mubr.msk.f32.mxu0 %vm1905_vm0, %v1906_v1  ;;  %1617 = vmatpush3.msra.mxu0 %v395_v6 }
 0x4ab   : > { %1626 = vmatprep.subr.mxu0 %v1906_v1 }
 0x574   : > { %v871_v49 = vpop.f32.mrb[6].mxu1 }
 0x575   : > { %v1605_v50 = vpop.f32.mrb[7].mxu1 }
 0x578   : > { %v798_v51 = vpop.f32.mrb[4].mxu0 }
 0x579   : > { %v872_v52 = vadd.f32 %v871_v49, %v798_v51  ;;  %v1600_v53 = vpop.f32.mrb[5].mxu0 }
 0x57c   : > { %v949_v54 = vpop.f32.mrb[6].mxu0 }
 0x57d   : > { %v1610_v55 = vpop.f32.mrb[7].mxu0  ;;  %v953_v56 = vsel %vm400_vm2, %v949_v54, -inf }
 0x57e   : > { %954 = vmax.xlane.f32.xlu1 %v953_v56 }
 0x58f   : > { %1117 = vrot.lane.b32.xlu1 %v2149_v11, %s1914_s15  ;;  %s1384_s15 = sshll.u32 %s296_s20, 4  ;;  %s2234_s15 = int_to_ptr.vmem [resolvable:$true] %s1384_s15 }
 0x590   : > { %s1827_s25 = scalar_lea.vmem %s2234_s15, 128  ;;  %p1834_p9 = scmp.lt.s32.totalorder %s2234_s15, %s1832_s29 }
 0x591   : > { %p1828_p0 = scmp.ne.s32.totalorder %s2234_s15, %s1827_s25  ;;  %p1835_p12 = scmp.lt.s32.totalorder %s1833_s14, %s1827_s25 }
 0x593   : > { %1115 = vrot.lane.b32.xlu1 %v2149_v11, %s1915_s8  ;;  %p1829_p3 = pnand %p1828_p0, %p2297_p1  ;;  %p1836_p2 = por %p1835_p12, %p1834_p9 }
 0x595   : > { %p1830_p7 = pneg %p1829_p3 }
 0x597   : > { %p1837_p13 = pnand %p1836_p2, %p1830_p7 }
 0x60b   : > { %v955_v57 = vpop.xlane.xlu1 %954 }
 0x60c   : > { %v956_v58 = vsub.f32 %v949_v54, %v955_v57 }
 0x60e   : > { %v957_v59 = vmul.f32 1.442695, %v956_v58 }
 0x60f   : > { %v1118_v2 = vpop.permute.xlu1 %1117 }
 0x610   : > { %1733 = vpow2.f32 %v957_v59 }
 0x613   : > { %v1116_v5 = vpop.permute.xlu1 %1115 }
 0x61a   : > { %v1734_v60 = vpop.eup %1733 }
 0x61b   : > { %v959_v61 = vsel %vm400_vm2, %v1734_v60, 0.0 }
 0x61c   : > { %960 = vadd.xlane.f32.xlu0 %v959_v61 }
 0x632   : > { %965 = vrot.lane.b32.xlu0 %v2149_v11, %s1916_s13 }
 0x6a9   : > { %v961_v62 = vpop.xlane.xlu0 %960 }
 0x6aa   : > { %1735 = vrcp.f32 %v961_v62 }
 0x6ad   : > { %v966_v63 = vpop.permute.xlu0 %965 }
 0x6ae   : > { %1612 = vmatpush3.msra.mxu1 %v966_v63 }
 0x6af   : > { %1621 = vmatprep.subr.mxu1 %v1906_v1 }
 0x6b4   : > { %v1736_v0 = vpop.eup %1735 }
 0x6b5   : > { %v963_v3 = vmul.f32 %v1736_v0, %v1734_v60 }
 0x6b7   : > { %v964_v4 = vadd.f32 %v963_v3, %v652_v41  ;;  %1614 = vmatmul.mubr.msk.f32.vlgmr.msra.gmra.mrb[8].mxu1 %vm400_vm2, %v963_v3 }
 0x6b8   : > { %1622 = vmatpush3.xpose.msk.msra.mxu1 %vm400_vm2, %v1118_v2  ;;  %1623 = vmatprep.mubr.msk.f32.mxu1 %vm1905_vm0, %v1906_v1 }
 0x6b9   : > { %1631 = vmatprep.subr.mxu1 %v1906_v1 }
 0x6bb   : > { %1624 = vmatmul.mubr.msk.f32.vlgmr.msra.gmra.mrb[10].mxu1 %vm400_vm2, %v1116_v5 }
 0x6bc   : > { %1633 = vmatprep.mubr.msk.f32.mxu1 %vm1905_vm0, %v1906_v1 }
 0x78a   : > { %v1037_v7 = vpop.f32.mrb[8].mxu1 }
 0x78b   : > { %v1615_v8 = vpop.f32.mrb[9].mxu1  ;;  %1619 = vmatmul.mubr.msk.f32.vlgmr.msra.gmra.mrb[8].mxu0 %vm400_vm2, %v1037_v7 }
 0x78c   : > { %1628 = vmatprep.mubr.msk.f32.mxu0 %vm1905_vm0, %v1906_v1  ;;  %v396_v1 = vld [vmem:[#allocation7 + $0x18] sm:$0xff] }
 0x78d   : > { %1632 = vmatpush3.msra.mxu1 %v396_v1 }
 0x78e   : > { %v1189_v9 = vpop.f32.mrb[10].mxu1 }
 0x78f   : > { %v1625_v10 = vpop.f32.mrb[11].mxu1  ;;  %v1193_v12 = vsel %vm400_vm2, %v1189_v9, -inf }
 0x790   : > { %1194 = vmax.xlane.f32.xlu0 %v1193_v12 }
 0x7a6   : > { %1205 = vrot.lane.b32.xlu0 %v2149_v11, %s1917_s10  ;;  %s2232_s10 = scalar_lea.hbm %s2282_s5, %s1533_s12 }
 0x81d   : > { %v1195_v13 = vpop.xlane.xlu0 %1194 }
 0x81e   : > { %v1196_v14 = vsub.f32 %v1189_v9, %v1195_v13 }
 0x820   : > { %v1197_v15 = vmul.f32 1.442695, %v1196_v14 }
 0x821   : > { %v1206_v16 = vpop.permute.xlu0 %1205 }
 0x822   : > { %1737 = vpow2.f32 %v1197_v15  ;;  %1627 = vmatpush3.msra.mxu0 %v1206_v16 }
 0x82c   : > { %v1738_v17 = vpop.eup %1737 }
 0x82d   : > { %v1199_v18 = vsel %vm400_vm2, %v1738_v17, 0.0 }
 0x82e   : > { %1200 = vadd.xlane.f32.xlu1 %v1199_v18 }
 0x85e   : > { %v1110_v19 = vpop.f32.mrb[8].mxu0 }
 0x85f   : > { %v1114_v20 = vadd.f32 %v1110_v19, %v872_v52  ;;  %v1620_v21 = vpop.f32.mrb[9].mxu0 }
 0x8bb   : > { %v1201_v22 = vpop.xlane.xlu1 %1200 }
 0x8bc   : > { %1739 = vrcp.f32 %v1201_v22 }
 0x8c6   : > { %v1740_v11 = vpop.eup %1739 }
 0x8c7   : > { %v1203_v23 = vmul.f32 %v1740_v11, %v1738_v17 }
 0x8c9   : > { %v1204_v24 = vadd.f32 %v1203_v23, %v964_v4  ;;  %1629 = vmatmul.mubr.msk.f32.vlgmr.msra.gmra.mrb[10].mxu0 %vm400_vm2, %v1203_v23 }
 0x8cb   : > { %v1364_v25 = vmul.f32 0.25, %v1204_v24 }
 0x8cd   : > { %1365 = vst.msk [vmem:[%s306_s7] sm:$0xff] %vm400_vm2, %v1364_v25 }
 0x99c   : > { %v1277_v26 = vpop.f32.mrb[10].mxu0 }
 0x99d   : > { %v1630_v27 = vpop.f32.mrb[11].mxu0  ;;  %1634 = vmatmul.mubr.msk.f32.vlgmr.msra.gmra.mrb[12].mxu1 %vm400_vm2, %v1277_v26 }
 0xa70   : > { %v1350_v28 = vpop.f32.mrb[12].mxu1 }
 0xa71   : > { %v1354_v30 = vadd.f32 %v1350_v28, %v1114_v20  ;;  %v1635_v31 = vpop.f32.mrb[13].mxu1 }
 0xa73   : > { %v1362_v32 = vadd.f32 %v1531_v29, %v1354_v30 }
 0xa75   : > { %1363 = vst.msk [vmem:[%s296_s20] sm:$0xff] %vm319_vm1, %v1362_v32 }
 0xa76   : > { %1840 = shalt.err (!%p1837_p13)
}
 0xa77   : > { %s1841_s18 = scalar_lea.hbm %s2232_s10, 128  ;;  %s1845_s17 = scalar_lea.hbm %s2282_s5, 256 }
 0xa78   : > { %p1842_p6 = scmp.ne.s32.totalorder %s2232_s10, %s1841_s18  ;;  %p1846_p5 = scmp.lt.u32.totalorder %s2232_s10, %s2282_s5 }
 0xa79   : > { %p1847_p8 = scmp.lt.u32.totalorder %s1845_s17, %s1841_s18  ;;  %p1849_p0 = scmp.lt.u32.totalorder %s1841_s18, %s2232_s10 }
 0xa7a   : > { %p1843_p10 = pnand %p1842_p6, %p2297_p1 }
 0xa7b   : > { %p1848_p11 = por %p1847_p8, %p1846_p5 }
 0xa7c   : > { %p1844_p4 = pneg %p1843_p10 }
 0xa7d   : > { %p1850_p3 = por %p1849_p0, %p1848_p11 }
 0xa7f   : > { %p1851_p7 = pnand %p1850_p3, %p1844_p4 }
 0xa81   : > { %1854 = shalt.err (!%p1851_p7)
}
 0xa82   : > { %1652 = dma.vmem_to_hbm [thread:$0]  (%p2297_p1), %s2234_s15, 128, %s2232_s10, %s1367_s27  }
 0xa83 PF: > { %s1399_s20 = sand.u32 1, %s1885_s21   ;;  %p2298_p9 = scmp.ne.s32.totalorder %s2288_s28, 0 }
 0xa84   : > { %p2299_p12 = scmp.ge.s32.totalorder %s1897_s24, 2  ;;  %s1400_s8 = scalar_lea.sflag [#allocation4], %s1399_s20 }
 0xa86   : > { %p1666_p2 = pnand %p2299_p12, %p2298_p9 }
 0xa88   : > { %1880 = dma.done.wait (!%p1666_p2), %s1400_s8, 128  }
 0xa89   : > { %1882 = vsyncadd (!%p1666_p2), %s1400_s8, 4294967168  ;;  %p21_p13 = scmp.ge.s32.totalorder %s2064_s26, 4   ;;  %s2300_s21 = smov %s1889_s22 }
 0xa8a   : > { %s2301_s22 = smov %s1893_s23  ;;  %s2302_s23 = smov %s2080_s11 }
 0xa8b   : > { %s2303_s24 = smov %s2064_s26  ;;  %23 = sbr.rel (!%p21_p13) target bundleno = 6 (0x6), region = 105 }
 0xa92   :  { %1412 = vsyncpa [#allocation3], 1 }
 0xa93   :  { %1414 = vsyncpa [#allocation3 + $0x1], 1 }
 0xa94   :  { %1415 = vsyncpa [#allocation6], 1 }
 0xa95   :  { %1416 = vsyncpa [#allocation4], 1 }
 0xa96   :  { %1418 = vsyncpa [#allocation4 + $0x1], 1 }

</bundles_post_ra>
